<compile_context>
chip_gen: v7x
topology: tpu7x:2x2x1
jax: 0.10.0
libtpu: 0.0.40
codegen_flags: <defaults>
</compile_context>

<pallas_src>
import functools

import jax
import jax.numpy as jnp
from jax import lax
from jax.experimental import pallas as pl
from jax.experimental.pallas import tpu as pltpu

EPS = 1e-5  # nn.BatchNorm1d default eps


# ----------------------------------------------------------------------------- kernels
def _conv_stats_kernel(*refs, K, pad, fuse_bn, mask_rows, n_valid):
    """One Conv1d layer on one batch tile, with the PREVIOUS layer's BN+ReLU fused in.

    refs (fuse_bn=True):  x_ref, scale_ref, shift_ref, w_ref, y_ref, stats_ref, hbuf_ref
    refs (fuse_bn=False): x_ref, w_ref, y_ref, stats_ref, hbuf_ref

      x_ref:     (TN, L, Cin)       bf16  previous layer's pre-BN conv output (or input)
      scale_ref: (1, Cin)           f32   folded BN scale of the previous layer
      shift_ref: (1, Cin)           f32   folded BN shift of the previous layer
      w_ref:     (K, Cin, Cout)     bf16  conv weight
      y_ref:     (TN, Lout, Cout)   bf16  this layer's pre-BN conv output
      stats_ref: (1, 2, Cout)       f32   per-tile per-channel [sum, sum_of_squares]
      hbuf_ref:  (TN, L+2*pad, Cin) bf16  VMEM scratch holding the zero-padded activation

    Conv bias is intentionally omitted: it cancels exactly under training-mode BN.
    """
    if fuse_bn:
        x_ref, scale_ref, shift_ref, w_ref, y_ref, stats_ref, hbuf_ref = refs
    else:
        x_ref, w_ref, y_ref, stats_ref, hbuf_ref = refs
        scale_ref = shift_ref = None

    TN, L, Cin = x_ref.shape
    _, _, Cout = w_ref.shape
    Lout = L + 2 * pad - K + 1

    # Previous layer's BN + ReLU (f32 math), producing this conv's bf16 operand.
    if fuse_bn:
        h = jnp.maximum(
            x_ref[...].astype(jnp.float32) * scale_ref[...][None] + shift_ref[...][None],
            0.0,
        ).astype(jnp.bfloat16)
    else:
        h = x_ref[...].astype(jnp.bfloat16)

    # Zero out batch-padding rows so they contribute nothing to this layer's BN stats
    # (and stay zero for every following layer).
    if mask_rows:
        row = pl.program_id(0) * TN + lax.broadcasted_iota(jnp.int32, (TN, 1, 1), 0)
        h = jnp.where(row < n_valid, h, jnp.zeros_like(h))

    # Tile-local zero padding into VMEM scratch (no full-activation concatenates).
    if pad > 0:
        zpad = jnp.zeros((TN, pad, Cin), hbuf_ref.dtype)
        hbuf_ref[:, :pad, :] = zpad
        hbuf_ref[:, pad + L:pad + L + pad, :] = zpad
        hbuf_ref[:, pad:pad + L, :] = h
    else:
        hbuf_ref[...] = h

    # K accumulated MXU matmuls (contraction Cin) over static scratch views; keeping the
    # accumulation as a dot chain lets v7x accumulate in the MRB.
    tap = hbuf_ref[:, 0:Lout, :].reshape(TN * Lout, Cin)
    acc = jnp.dot(tap, w_ref[0], preferred_element_type=jnp.float32)
    for k in range(1, K):
        tap = hbuf_ref[:, k:k + Lout, :].reshape(TN * Lout, Cin)
        acc = acc + jnp.dot(tap, w_ref[k], preferred_element_type=jnp.float32)

    # Pre-BN output stored bf16 (it is only ever consumed as a bf16 MXU operand).
    y_ref[...] = acc.reshape(TN, Lout, Cout).astype(y_ref.dtype)

    # Per-channel partials for the BatchNorm batch statistics, taken from the f32
    # accumulator (cross-tile reduction happens in the wrapper).
    s1 = jnp.sum(acc, axis=0, keepdims=True)           # (1, Cout)
    s2 = jnp.sum(acc * acc, axis=0, keepdims=True)     # (1, Cout)
    stats_ref[...] = jnp.concatenate([s1, s2], axis=0)[None]


def _bn_relu_maxpool_kernel(y_ref, scale_ref, shift_ref, out_ref):
    """Last layer epilogue: folded BN + ReLU with AdaptiveMaxPool1d(1) fused in."""
    h = jnp.maximum(
        y_ref[...].astype(jnp.float32) * scale_ref[...][None] + shift_ref[...][None], 0.0
    )                                                   # (TN, Lout, C) f32
    out_ref[...] = jnp.max(h, axis=1, keepdims=True).astype(out_ref.dtype)  # (TN, 1, C)


# ----------------------------------------------------------------------------- helpers
def _chip_config():
    """Return (per-step VMEM budget, vmem_limit_bytes or None, prefer >=2 grid steps)."""
    kind = ""
    try:
        kind = jax.devices()[0].device_kind.lower()
    except Exception:
        pass
    if "v5" in kind or "v6" in kind:
        # 128 MiB physical VMEM, single TensorCore: big tiles, no multi-step preference.
        return 40 << 20, 96 << 20, False
    if "v7" in kind or "7x" in kind:
        # 64 MiB physical VMEM, 2 TensorCores: cap tiles, keep >=2 steps for megacore.
        return 24 << 20, 56 << 20, True
    # Unknown chip: conservative defaults that fit every generation's default scoped VMEM.
    return 8 << 20, None, False


def _conv_vmem_per_row(L, cin, cout, K, pad):
    """Approximate live VMEM bytes per batch row in the conv kernel (incl. double buffers)."""
    lp = L + 2 * pad
    lout = lp - K + 1
    return (2 * L * cin * 2          # bf16 input block, double-buffered
            + L * cin * 4            # f32 BN+ReLU temporary
            + lp * cin * 2           # zero-padded bf16 scratch
            + K * lout * cin * 2     # per-tap matmul operands
            + lout * cout * 4        # f32 accumulator
            + 2 * lout * cout * 2)   # bf16 output block, double-buffered


def _pick_batch_tile(n, per_row_bytes, budget_bytes, prefer_multi_step):
    """Largest batch tile under the VMEM budget; N need not divide evenly (wrapper pads)."""
    tn_max = max(1, min(n, budget_bytes // max(per_row_bytes, 1)))
    if prefer_multi_step and n >= 2:
        tn_max = min(tn_max, pl.cdiv(n, 2))   # >=2 balanced steps for the v7x megacore
    steps = pl.cdiv(n, tn_max)
    tn = pl.cdiv(n, steps)                    # re-balance so the padded tail is minimal
    return int(tn), int(steps)


# ------------------------------------------------------------------------ pallas calls
def _conv_stats_call(x, w, scale, shift, *, K, pad, tn, n_valid, vmem_limit):
    n, L, cin = x.shape                       # n is already a multiple of tn
    _, _, cout = w.shape
    lout = L + 2 * pad - K + 1
    tiles = n // tn
    fuse_bn = scale is not None
    mask_rows = fuse_bn and (n != n_valid)

    in_specs = [pl.BlockSpec((tn, L, cin), lambda i: (i, 0, 0))]
    args = [x]
    if fuse_bn:
        in_specs += [pl.BlockSpec((1, cin), lambda i: (0, 0)),
                     pl.BlockSpec((1, cin), lambda i: (0, 0))]
        args += [scale, shift]
    in_specs.append(pl.BlockSpec((K, cin, cout), lambda i: (0, 0, 0)))   # resident weight
    args.append(w)

    cp_kwargs = dict(dimension_semantics=("parallel",))
    if vmem_limit is not None:
        cp_kwargs["vmem_limit_bytes"] = int(vmem_limit)

    cost = pl.CostEstimate(
        flops=2 * n * lout * K * cin * cout,
        transcendentals=0,
        bytes_accessed=(n * L * cin * 2 + K * cin * cout * 2
                        + n * lout * cout * 2 + tiles * 2 * cout * 4 + 2 * cin * 4),
    )

    return pl.pallas_call(
        functools.partial(_conv_stats_kernel, K=K, pad=pad, fuse_bn=fuse_bn,
                          mask_rows=mask_rows, n_valid=n_valid),
        grid=(tiles,),
        in_specs=in_specs,
        out_specs=(
            pl.BlockSpec((tn, lout, cout), lambda i: (i, 0, 0)),
            pl.BlockSpec((1, 2, cout), lambda i: (i, 0, 0)),
        ),
        out_shape=(
            jax.ShapeDtypeStruct((n, lout, cout), jnp.bfloat16),       # pre-BN y, bf16
            jax.ShapeDtypeStruct((tiles, 2, cout), jnp.float32),       # BN partials
        ),
        scratch_shapes=[pltpu.VMEM((tn, L + 2 * pad, cin), jnp.bfloat16)],
        compiler_params=pltpu.CompilerParams(**cp_kwargs),
        cost_estimate=cost,
    )(*args)


def _bn_relu_maxpool_call(y, scale, shift, *, tn, vmem_limit):
    n, lout, c = y.shape
    tiles = n // tn
    cp_kwargs = dict(dimension_semantics=("parallel",))
    if vmem_limit is not None:
        cp_kwargs["vmem_limit_bytes"] = int(vmem_limit)
    cost = pl.CostEstimate(flops=3 * n * lout * c, transcendentals=0,
                           bytes_accessed=n * lout * c * 2 + n * c * 4 + 2 * c * 4)
    out = pl.pallas_call(
        _bn_relu_maxpool_kernel,
        grid=(tiles,),
        in_specs=[pl.BlockSpec((tn, lout, c), lambda i: (i, 0, 0)),
                  pl.BlockSpec((1, c), lambda i: (0, 0)),
                  pl.BlockSpec((1, c), lambda i: (0, 0))],
        out_specs=pl.BlockSpec((tn, 1, c), lambda i: (i, 0, 0)),
        out_shape=jax.ShapeDtypeStruct((n, 1, c), jnp.float32),
        compiler_params=pltpu.CompilerParams(**cp_kwargs),
        cost_estimate=cost,
    )(y, scale, shift)
    return out[:, 0, :]                                  # (N_pad, C) pooled output


# ----------------------------------------------------------------------------- forward
def stack_cnn_forward(x_ncl, params, padding, force_tile=None):
    """x_ncl: (N, Cin, L) PyTorch-layout input.
    params: list of (w[K,Cin,Cout], b[Cout], gamma[Cout], beta[Cout]) per layer.
    Returns (N, Cout) == StackCNN.forward(x).  BatchNorm uses training-mode batch
    statistics (a freshly constructed nn.BatchNorm1d in .train()); eval-mode running
    stats are not modeled.  `force_tile` overrides the batch tile (testing only)."""
    n, cin, L = x_ncl.shape
    K = params[0][0].shape[0]
    out_dtype = x_ncl.dtype

    budget, vmem_limit, prefer_multi = _chip_config()

    # Static per-layer shapes (stride=1 conv): L_out = L + 2*pad - K + 1.
    shapes = []
    lcur, cin_l = L, cin
    for (w, _, _, _) in params:
        k_l, cin_w, cout = w.shape
        assert k_l == K and cin_w == cin_l, "unexpected weight shape"
        lout = lcur + 2 * padding - K + 1
        assert lout >= 1, "sequence length collapsed to < 1"
        shapes.append((lcur, cin_l, lout, cout))
        lcur, cin_l = lout, cout

    per_row = max(_conv_vmem_per_row(l, ci, co, K, padding) for (l, ci, _, co) in shapes)
    if force_tile is not None:
        tn = max(1, int(force_tile))
        steps = int(pl.cdiv(n, tn))
    else:
        tn, steps = _pick_batch_tile(n, per_row, budget, prefer_multi)
    n_pad = tn * steps

    # NCL -> NLC so channels sit on the TPU lane axis; bf16 since the first consumer is
    # an MXU matmul operand.  Pad the batch to a tile multiple with zero rows (the
    # kernels keep padded rows at zero and exclude them from the BN statistics).
    h = jnp.transpose(x_ncl, (0, 2, 1)).astype(jnp.bfloat16)
    if n_pad != n:
        h = jnp.pad(h, ((0, n_pad - n), (0, 0), (0, 0)))

    scale = shift = None
    y = h
    for (w, _b, gamma, beta), (_, _, lout, cout) in zip(params, shapes):
        # NOTE: conv bias `_b` is NOT used — it cancels exactly under training-mode BN.
        y, part = _conv_stats_call(y, w.astype(jnp.bfloat16), scale, shift,
                                   K=K, pad=padding, tn=tn, n_valid=n,
                                   vmem_limit=vmem_limit)
        # Cross-tile BN reduction (tiny (tiles, 2, Cout) tensor) -> folded scale/shift.
        s = jnp.sum(part, axis=0)                        # (2, Cout)
        cnt = float(n * lout)                            # padded rows excluded
        mean = s[0] / cnt
        # One-pass variance; the clamp guards against f32 cancellation for large means.
        var = jnp.maximum(s[1] / cnt - mean * mean, 0.0)
        scale_v = gamma.astype(jnp.float32) * lax.rsqrt(var + EPS)
        shift_v = beta.astype(jnp.float32) - mean * scale_v
        scale = scale_v.reshape(1, cout)
        shift = shift_v.reshape(1, cout)

    # Last layer's BN + ReLU with AdaptiveMaxPool1d(1) fused in.
    pooled = _bn_relu_maxpool_call(y, scale, shift, tn=tn, vmem_limit=vmem_limit)
    return pooled[:n].astype(out_dtype)


# --------------------------------------------------------------------------- reference
def _reference_forward(x_ncl, params, pad):
    """Pure-JAX f32 reference of the PyTorch StackCNN forward (train-mode BN)."""
    h = x_ncl.astype(jnp.float32)
    for (w, b, gamma, beta) in params:
        K, cin, cout = w.shape
        n, _, L = h.shape
        lout = L + 2 * pad - K + 1
        hp = jnp.pad(h, ((0, 0), (0, 0), (pad, pad)))
        taps = jnp.stack([hp[:, :, k:k + lout] for k in range(K)], axis=0)  # (K,N,Cin,Lout)
        y = jnp.einsum('kco,knct->not', w, taps) + b[None, :, None]
        mean = y.mean(axis=(0, 2), keepdims=True)
        var = ((y - mean) ** 2).mean(axis=(0, 2), keepdims=True)
        y = (y - mean) * lax.rsqrt(var + EPS) * gamma[None, :, None] + beta[None, :, None]
        h = jnp.maximum(y, 0.0)
    return jnp.max(h, axis=-1)                            # (N, Cout)


if __name__ == "__main__":
    # StackCNN(layer_num=3, in_channels=4, out_channels=32, kernel_size=3, padding=1)
    layer_num = 3
    N, Cin, L = 2, 4, 16
    Cout, K, pad = 32, 3, 1

    key = jax.random.PRNGKey(0)
    params = []
    cin = Cin
    for _ in range(layer_num):
        key, k1, k2, k3, k4 = jax.random.split(key, 5)
        w = 0.1 * jax.random.normal(k1, (K, cin, Cout), jnp.float32)
        b = 0.05 * jax.random.normal(k2, (Cout,), jnp.float32)
        gamma = 1.0 + 0.1 * jax.random.normal(k3, (Cout,), jnp.float32)
        beta = 0.05 * jax.random.normal(k4, (Cout,), jnp.float32)
        params.append((w, b, gamma, beta))
        cin = Cout

    key, kx = jax.random.split(key)
    x = jax.random.normal(kx, (N, Cin, L), jnp.float32)

    fwd = jax.jit(functools.partial(stack_cnn_forward, padding=pad))
    out = jax.block_until_ready(fwd(x, params))
    assert out.shape == (N, Cout), out.shape
    ref = _reference_forward(x, params, pad)
    err = float(jnp.max(jnp.abs(out.astype(jnp.float32) - ref)))
    assert err < 0.25, f"max abs err vs reference too large: {err}"

    # Awkward (non-divisor) batch: exercises batch padding + in-kernel row masking.
    key, kx2 = jax.random.split(key)
    N2 = 3
    x2 = jax.random.normal(kx2, (N2, Cin, L), jnp.float32)
    fwd2 = jax.jit(functools.partial(stack_cnn_forward, padding=pad, force_tile=2))
    out2 = jax.block_until_ready(fwd2(x2, params))
    assert out2.shape == (N2, Cout), out2.shape
    ref2 = _reference_forward(x2, params, pad)
    err2 = float(jnp.max(jnp.abs(out2.astype(jnp.float32) - ref2)))
    assert err2 < 0.25, f"max abs err (ragged batch) vs reference too large: {err2}"

    print("KERNEL_OK")
</pallas_src>

<mosaic_0001>
module attributes {stable_mosaic.version = 11 : i64} {
  func.func @_conv_stats_kernel(%arg0: i32, %arg1: memref<2x16x4xbf16, #tpu.memory_space<vmem>>, %arg2: memref<3x4x32xbf16, #tpu.memory_space<vmem>>, %arg3: memref<2x16x32xbf16, #tpu.memory_space<vmem>>, %arg4: memref<1x2x32xf32, #tpu.memory_space<vmem>>, %arg5: memref<2x18x4xbf16, #tpu.memory_space<vmem>>) attributes {dimension_semantics = [#tpu.dimension_semantics<parallel>], iteration_bounds = array<i64: 1>, scalar_prefetch = 0 : i64, scratch_operands = 1 : i64, tpu.core_type = #tpu.core_type<tc>, window_params = [{transform_indices = @transform_0, window_bounds = array<i64: 2, 16, 4>}, {pipeline_mode = #tpu.pipeline_mode<synchronous>, transform_indices = @transform_1, window_bounds = array<i64: 3, 4, 32>}, {transform_indices = @transform_2, window_bounds = array<i64: 2, 16, 32>}, {transform_indices = @transform_3, window_bounds = array<i64: 1, 2, 32>}]} {
    %c0 = arith.constant 0 : index
    %c0_0 = arith.constant 0 : index
    %c0_1 = arith.constant 0 : index
    %0 = vector.load %arg1[%c0, %c0_0, %c0_1] : memref<2x16x4xbf16, #tpu.memory_space<vmem>>, vector<2x16x4xbf16>
    %cst = arith.constant 0.000000e+00 : bf16
    %1 = vector.broadcast %cst : bf16 to vector<2x1x4xbf16>
    %c0_2 = arith.constant 0 : index
    %c0_3 = arith.constant 0 : index
    %c0_4 = arith.constant 0 : index
    %2 = vector.load %arg5[%c0_2, %c0_3, %c0_4] : memref<2x18x4xbf16, #tpu.memory_space<vmem>>, vector<2x1x4xbf16>
    tpu.vector_store %arg5[%c0_2, %c0_3, %c0_4], %1 {strides = array<i32>} : memref<2x18x4xbf16, #tpu.memory_space<vmem>>, vector<2x1x4xbf16>,
    %c0_5 = arith.constant 0 : index
    %c17 = arith.constant 17 : index
    %c0_6 = arith.constant 0 : index
    %3 = vector.load %arg5[%c0_5, %c17, %c0_6] : memref<2x18x4xbf16, #tpu.memory_space<vmem>>, vector<2x1x4xbf16>
    tpu.vector_store %arg5[%c0_5, %c17, %c0_6], %1 {strides = array<i32>} : memref<2x18x4xbf16, #tpu.memory_space<vmem>>, vector<2x1x4xbf16>,
    %c0_7 = arith.constant 0 : index
    %c1 = arith.constant 1 : index
    %c0_8 = arith.constant 0 : index
    %4 = vector.load %arg5[%c0_7, %c1, %c0_8] : memref<2x18x4xbf16, #tpu.memory_space<vmem>>, vector<2x16x4xbf16>
    tpu.vector_store %arg5[%c0_7, %c1, %c0_8], %0 {strides = array<i32>} : memref<2x18x4xbf16, #tpu.memory_space<vmem>>, vector<2x16x4xbf16>,
    %c0_9 = arith.constant 0 : index
    %c0_10 = arith.constant 0 : index
    %c0_11 = arith.constant 0 : index
    %5 = vector.load %arg5[%c0_9, %c0_10, %c0_11] : memref<2x18x4xbf16, #tpu.memory_space<vmem>>, vector<2x16x4xbf16>
    %6 = vector.shape_cast %5 : vector<2x16x4xbf16> to vector<32x4xbf16>
    %c0_12 = arith.constant 0 : index
    %c0_13 = arith.constant 0 : index
    %c0_14 = arith.constant 0 : index
    %7 = vector.load %arg2[%c0_12, %c0_13, %c0_14] : memref<3x4x32xbf16, #tpu.memory_space<vmem>>, vector<1x4x32xbf16>
    %8 = vector.shape_cast %7 : vector<1x4x32xbf16> to vector<4x32xbf16>
    %cst_15 = arith.constant dense<0.000000e+00> : vector<32x32xf32>
    %9 = tpu.matmul %6, %8, %cst_15 {dimension_numbers = #tpu.dot_dimension_numbers<[1], [0], [0], [1], [0, 0, 1, 1], [], []>} : vector<32x4xbf16>, vector<4x32xbf16>, vector<32x32xf32> -> vector<32x32xf32>
    %c0_16 = arith.constant 0 : index
    %c1_17 = arith.constant 1 : index
    %c0_18 = arith.constant 0 : index
    %10 = vector.load %arg5[%c0_16, %c1_17, %c0_18] : memref<2x18x4xbf16, #tpu.memory_space<vmem>>, vector<2x16x4xbf16>
    %11 = vector.shape_cast %10 : vector<2x16x4xbf16> to vector<32x4xbf16>
    %c1_19 = arith.constant 1 : index
    %c0_20 = arith.constant 0 : index
    %c0_21 = arith.constant 0 : index
    %12 = vector.load %arg2[%c1_19, %c0_20, %c0_21] : memref<3x4x32xbf16, #tpu.memory_space<vmem>>, vector<1x4x32xbf16>
    %13 = vector.shape_cast %12 : vector<1x4x32xbf16> to vector<4x32xbf16>
    %cst_22 = arith.constant dense<0.000000e+00> : vector<32x32xf32>
    %14 = tpu.matmul %11, %13, %cst_22 {dimension_numbers = #tpu.dot_dimension_numbers<[1], [0], [0], [1], [0, 0, 1, 1], [], []>} : vector<32x4xbf16>, vector<4x32xbf16>, vector<32x32xf32> -> vector<32x32xf32>
    %15 = arith.addf %9, %14 : vector<32x32xf32>
    %c0_23 = arith.constant 0 : index
    %c2 = arith.constant 2 : index
    %c0_24 = arith.constant 0 : index
    %16 = vector.load %arg5[%c0_23, %c2, %c0_24] : memref<2x18x4xbf16, #tpu.memory_space<vmem>>, vector<2x16x4xbf16>
    %17 = vector.shape_cast %16 : vector<2x16x4xbf16> to vector<32x4xbf16>
    %c2_25 = arith.constant 2 : index
    %c0_26 = arith.constant 0 : index
    %c0_27 = arith.constant 0 : index
    %18 = vector.load %arg2[%c2_25, %c0_26, %c0_27] : memref<3x4x32xbf16, #tpu.memory_space<vmem>>, vector<1x4x32xbf16>
    %19 = vector.shape_cast %18 : vector<1x4x32xbf16> to vector<4x32xbf16>
    %cst_28 = arith.constant dense<0.000000e+00> : vector<32x32xf32>
    %20 = tpu.matmul %17, %19, %cst_28 {dimension_numbers = #tpu.dot_dimension_numbers<[1], [0], [0], [1], [0, 0, 1, 1], [], []>} : vector<32x4xbf16>, vector<4x32xbf16>, vector<32x32xf32> -> vector<32x32xf32>
    %21 = arith.addf %15, %20 : vector<32x32xf32>
    %22 = vector.shape_cast %21 : vector<32x32xf32> to vector<2x16x32xf32>
    %23 = arith.truncf %22 : vector<2x16x32xf32> to vector<2x16x32xbf16>
    %c0_29 = arith.constant 0 : index
    %c0_30 = arith.constant 0 : index
    %c0_31 = arith.constant 0 : index
    %24 = vector.load %arg3[%c0_29, %c0_30, %c0_31] : memref<2x16x32xbf16, #tpu.memory_space<vmem>>, vector<2x16x32xbf16>
    tpu.vector_store %arg3[%c0_29, %c0_30, %c0_31], %23 {strides = array<i32>} : memref<2x16x32xbf16, #tpu.memory_space<vmem>>, vector<2x16x32xbf16>,
    %cst_32 = arith.constant dense<0.000000e+00> : vector<32xf32>
    %25 = vector.multi_reduction <add>, %21, %cst_32 [0] : vector<32x32xf32> to vector<32xf32>
    %26 = vector.shape_cast %25 : vector<32xf32> to vector<1x32xf32>
    %27 = arith.mulf %21, %21 : vector<32x32xf32>
    %cst_33 = arith.constant dense<0.000000e+00> : vector<32xf32>
    %28 = vector.multi_reduction <add>, %27, %cst_33 [0] : vector<32x32xf32> to vector<32xf32>
    %29 = vector.shape_cast %28 : vector<32xf32> to vector<1x32xf32>
    %30 = tpu.concatenate %26, %29 in 0 : vector<1x32xf32>, vector<1x32xf32> -> vector<2x32xf32>
    %31 = vector.shape_cast %30 : vector<2x32xf32> to vector<1x2x32xf32>
    %c0_34 = arith.constant 0 : index
    %c0_35 = arith.constant 0 : index
    %c0_36 = arith.constant 0 : index
    %32 = vector.load %arg4[%c0_34, %c0_35, %c0_36] : memref<1x2x32xf32, #tpu.memory_space<vmem>>, vector<1x2x32xf32>
    tpu.vector_store %arg4[%c0_34, %c0_35, %c0_36], %31 {strides = array<i32>} : memref<1x2x32xf32, #tpu.memory_space<vmem>>, vector<1x2x32xf32>,
    return
  }
  func.func @transform_0(%arg0: i32) -> (i32, i32, i32) {
    %c0_i32 = arith.constant 0 : i32
    %c0_i32_0 = arith.constant 0 : i32
    %c0_i32_1 = arith.constant 0 : i32
    return %arg0, %c0_i32, %c0_i32_0 : i32, i32, i32
  }
  func.func @transform_1(%arg0: i32) -> (i32, i32, i32) {
    %c0_i32 = arith.constant 0 : i32
    %c0_i32_0 = arith.constant 0 : i32
    %c0_i32_1 = arith.constant 0 : i32
    %c0_i32_2 = arith.constant 0 : i32
    return %c0_i32, %c0_i32_0, %c0_i32_1 : i32, i32, i32
  }
  func.func @transform_2(%arg0: i32) -> (i32, i32, i32) {
    %c0_i32 = arith.constant 0 : i32
    %c0_i32_0 = arith.constant 0 : i32
    %c0_i32_1 = arith.constant 0 : i32
    return %arg0, %c0_i32, %c0_i32_0 : i32, i32, i32
  }
  func.func @transform_3(%arg0: i32) -> (i32, i32, i32) {
    %c0_i32 = arith.constant 0 : i32
    %c0_i32_0 = arith.constant 0 : i32
    %c0_i32_1 = arith.constant 0 : i32
    return %arg0, %c0_i32, %c0_i32_0 : i32, i32, i32
  }
}

module attributes {stable_mosaic.version = 11 : i64} {
  func.func @_conv_stats_kernel(%arg0: i32, %arg1: memref<2x16x32xbf16, #tpu.memory_space<vmem>>, %arg2: memref<1x32xf32, #tpu.memory_space<vmem>>, %arg3: memref<1x32xf32, #tpu.memory_space<vmem>>, %arg4: memref<3x32x32xbf16, #tpu.memory_space<vmem>>, %arg5: memref<2x16x32xbf16, #tpu.memory_space<vmem>>, %arg6: memref<1x2x32xf32, #tpu.memory_space<vmem>>, %arg7: memref<2x18x32xbf16, #tpu.memory_space<vmem>>) attributes {dimension_semantics = [#tpu.dimension_semantics<parallel>], iteration_bounds = array<i64: 1>, scalar_prefetch = 0 : i64, scratch_operands = 1 : i64, tpu.core_type = #tpu.core_type<tc>, window_params = [{transform_indices = @transform_0, window_bounds = array<i64: 2, 16, 32>}, {pipeline_mode = #tpu.pipeline_mode<synchronous>, transform_indices = @transform_1, window_bounds = array<i64: 1, 32>}, {pipeline_mode = #tpu.pipeline_mode<synchronous>, transform_indices = @transform_2, window_bounds = array<i64: 1, 32>}, {pipeline_mode = #tpu.pipeline_mode<synchronous>, transform_indices = @transform_3, window_bounds = array<i64: 3, 32, 32>}, {transform_indices = @transform_4, window_bounds = array<i64: 2, 16, 32>}, {transform_indices = @transform_5, window_bounds = array<i64: 1, 2, 32>}]} {
    %c0 = arith.constant 0 : index
    %c0_0 = arith.constant 0 : index
    %c0_1 = arith.constant 0 : index
    %0 = vector.load %arg1[%c0, %c0_0, %c0_1] : memref<2x16x32xbf16, #tpu.memory_space<vmem>>, vector<2x16x32xbf16>
    %1 = arith.extf %0 : vector<2x16x32xbf16> to vector<2x16x32xf32>
    %c0_2 = arith.constant 0 : index
    %c0_3 = arith.constant 0 : index
    %2 = vector.load %arg2[%c0_2, %c0_3] : memref<1x32xf32, #tpu.memory_space<vmem>>, vector<1x32xf32>
    %3 = vector.shape_cast %2 : vector<1x32xf32> to vector<1x1x32xf32>
    %4 = vector.broadcast %3 : vector<1x1x32xf32> to vector<2x16x32xf32>
    %5 = arith.mulf %1, %4 : vector<2x16x32xf32>
    %c0_4 = arith.constant 0 : index
    %c0_5 = arith.constant 0 : index
    %6 = vector.load %arg3[%c0_4, %c0_5] : memref<1x32xf32, #tpu.memory_space<vmem>>, vector<1x32xf32>
    %7 = vector.shape_cast %6 : vector<1x32xf32> to vector<1x1x32xf32>
    %8 = vector.broadcast %7 : vector<1x1x32xf32> to vector<2x16x32xf32>
    %9 = arith.addf %5, %8 : vector<2x16x32xf32>
    %cst = arith.constant 0.000000e+00 : f32
    %10 = vector.broadcast %cst : f32 to vector<2x16x32xf32>
    %11 = arith.maximumf %9, %10 : vector<2x16x32xf32>
    %12 = arith.truncf %11 : vector<2x16x32xf32> to vector<2x16x32xbf16>
    %cst_6 = arith.constant 0.000000e+00 : bf16
    %13 = vector.broadcast %cst_6 : bf16 to vector<2x1x32xbf16>
    %c0_7 = arith.constant 0 : index
    %c0_8 = arith.constant 0 : index
    %c0_9 = arith.constant 0 : index
    %14 = vector.load %arg7[%c0_7, %c0_8, %c0_9] : memref<2x18x32xbf16, #tpu.memory_space<vmem>>, vector<2x1x32xbf16>
    tpu.vector_store %arg7[%c0_7, %c0_8, %c0_9], %13 {strides = array<i32>} : memref<2x18x32xbf16, #tpu.memory_space<vmem>>, vector<2x1x32xbf16>,
    %c0_10 = arith.constant 0 : index
    %c17 = arith.constant 17 : index
    %c0_11 = arith.constant 0 : index
    %15 = vector.load %arg7[%c0_10, %c17, %c0_11] : memref<2x18x32xbf16, #tpu.memory_space<vmem>>, vector<2x1x32xbf16>
    tpu.vector_store %arg7[%c0_10, %c17, %c0_11], %13 {strides = array<i32>} : memref<2x18x32xbf16, #tpu.memory_space<vmem>>, vector<2x1x32xbf16>,
    %c0_12 = arith.constant 0 : index
    %c1 = arith.constant 1 : index
    %c0_13 = arith.constant 0 : index
    %16 = vector.load %arg7[%c0_12, %c1, %c0_13] : memref<2x18x32xbf16, #tpu.memory_space<vmem>>, vector<2x16x32xbf16>
    tpu.vector_store %arg7[%c0_12, %c1, %c0_13], %12 {strides = array<i32>} : memref<2x18x32xbf16, #tpu.memory_space<vmem>>, vector<2x16x32xbf16>,
    %c0_14 = arith.constant 0 : index
    %c0_15 = arith.constant 0 : index
    %c0_16 = arith.constant 0 : index
    %17 = vector.load %arg7[%c0_14, %c0_15, %c0_16] : memref<2x18x32xbf16, #tpu.memory_space<vmem>>, vector<2x16x32xbf16>
    %18 = vector.shape_cast %17 : vector<2x16x32xbf16> to vector<32x32xbf16>
    %c0_17 = arith.constant 0 : index
    %c0_18 = arith.constant 0 : index
    %c0_19 = arith.constant 0 : index
    %19 = vector.load %arg4[%c0_17, %c0_18, %c0_19] : memref<3x32x32xbf16, #tpu.memory_space<vmem>>, vector<1x32x32xbf16>
    %20 = vector.shape_cast %19 : vector<1x32x32xbf16> to vector<32x32xbf16>
    %cst_20 = arith.constant dense<0.000000e+00> : vector<32x32xf32>
    %21 = tpu.matmul %18, %20, %cst_20 {dimension_numbers = #tpu.dot_dimension_numbers<[1], [0], [0], [1], [0, 0, 1, 1], [], []>} : vector<32x32xbf16>, vector<32x32xbf16>, vector<32x32xf32> -> vector<32x32xf32>
    %c0_21 = arith.constant 0 : index
    %c1_22 = arith.constant 1 : index
    %c0_23 = arith.constant 0 : index
    %22 = vector.load %arg7[%c0_21, %c1_22, %c0_23] : memref<2x18x32xbf16, #tpu.memory_space<vmem>>, vector<2x16x32xbf16>
    %23 = vector.shape_cast %22 : vector<2x16x32xbf16> to vector<32x32xbf16>
    %c1_24 = arith.constant 1 : index
    %c0_25 = arith.constant 0 : index
    %c0_26 = arith.constant 0 : index
    %24 = vector.load %arg4[%c1_24, %c0_25, %c0_26] : memref<3x32x32xbf16, #tpu.memory_space<vmem>>, vector<1x32x32xbf16>
    %25 = vector.shape_cast %24 : vector<1x32x32xbf16> to vector<32x32xbf16>
    %cst_27 = arith.constant dense<0.000000e+00> : vector<32x32xf32>
    %26 = tpu.matmul %23, %25, %cst_27 {dimension_numbers = #tpu.dot_dimension_numbers<[1], [0], [0], [1], [0, 0, 1, 1], [], []>} : vector<32x32xbf16>, vector<32x32xbf16>, vector<32x32xf32> -> vector<32x32xf32>
    %27 = arith.addf %21, %26 : vector<32x32xf32>
    %c0_28 = arith.constant 0 : index
    %c2 = arith.constant 2 : index
    %c0_29 = arith.constant 0 : index
    %28 = vector.load %arg7[%c0_28, %c2, %c0_29] : memref<2x18x32xbf16, #tpu.memory_space<vmem>>, vector<2x16x32xbf16>
    %29 = vector.shape_cast %28 : vector<2x16x32xbf16> to vector<32x32xbf16>
    %c2_30 = arith.constant 2 : index
    %c0_31 = arith.constant 0 : index
    %c0_32 = arith.constant 0 : index
    %30 = vector.load %arg4[%c2_30, %c0_31, %c0_32] : memref<3x32x32xbf16, #tpu.memory_space<vmem>>, vector<1x32x32xbf16>
    %31 = vector.shape_cast %30 : vector<1x32x32xbf16> to vector<32x32xbf16>
    %cst_33 = arith.constant dense<0.000000e+00> : vector<32x32xf32>
    %32 = tpu.matmul %29, %31, %cst_33 {dimension_numbers = #tpu.dot_dimension_numbers<[1], [0], [0], [1], [0, 0, 1, 1], [], []>} : vector<32x32xbf16>, vector<32x32xbf16>, vector<32x32xf32> -> vector<32x32xf32>
    %33 = arith.addf %27, %32 : vector<32x32xf32>
    %34 = vector.shape_cast %33 : vector<32x32xf32> to vector<2x16x32xf32>
    %35 = arith.truncf %34 : vector<2x16x32xf32> to vector<2x16x32xbf16>
    %c0_34 = arith.constant 0 : index
    %c0_35 = arith.constant 0 : index
    %c0_36 = arith.constant 0 : index
    %36 = vector.load %arg5[%c0_34, %c0_35, %c0_36] : memref<2x16x32xbf16, #tpu.memory_space<vmem>>, vector<2x16x32xbf16>
    tpu.vector_store %arg5[%c0_34, %c0_35, %c0_36], %35 {strides = array<i32>} : memref<2x16x32xbf16, #tpu.memory_space<vmem>>, vector<2x16x32xbf16>,
    %cst_37 = arith.constant dense<0.000000e+00> : vector<32xf32>
    %37 = vector.multi_reduction <add>, %33, %cst_37 [0] : vector<32x32xf32> to vector<32xf32>
    %38 = vector.shape_cast %37 : vector<32xf32> to vector<1x32xf32>
    %39 = arith.mulf %33, %33 : vector<32x32xf32>
    %cst_38 = arith.constant dense<0.000000e+00> : vector<32xf32>
    %40 = vector.multi_reduction <add>, %39, %cst_38 [0] : vector<32x32xf32> to vector<32xf32>
    %41 = vector.shape_cast %40 : vector<32xf32> to vector<1x32xf32>
    %42 = tpu.concatenate %38, %41 in 0 : vector<1x32xf32>, vector<1x32xf32> -> vector<2x32xf32>
    %43 = vector.shape_cast %42 : vector<2x32xf32> to vector<1x2x32xf32>
    %c0_39 = arith.constant 0 : index
    %c0_40 = arith.constant 0 : index
    %c0_41 = arith.constant 0 : index
    %44 = vector.load %arg6[%c0_39, %c0_40, %c0_41] : memref<1x2x32xf32, #tpu.memory_space<vmem>>, vector<1x2x32xf32>
    tpu.vector_store %arg6[%c0_39, %c0_40, %c0_41], %43 {strides = array<i32>} : memref<1x2x32xf32, #tpu.memory_space<vmem>>, vector<1x2x32xf32>,
    return
  }
  func.func @transform_0(%arg0: i32) -> (i32, i32, i32) {
    %c0_i32 = arith.constant 0 : i32
    %c0_i32_0 = arith.constant 0 : i32
    %c0_i32_1 = arith.constant 0 : i32
    return %arg0, %c0_i32, %c0_i32_0 : i32, i32, i32
  }
  func.func @transform_1(%arg0: i32) -> (i32, i32) {
    %c0_i32 = arith.constant 0 : i32
    %c0_i32_0 = arith.constant 0 : i32
    %c0_i32_1 = arith.constant 0 : i32
    return %c0_i32, %c0_i32_0 : i32, i32
  }
  func.func @transform_2(%arg0: i32) -> (i32, i32) {
    %c0_i32 = arith.constant 0 : i32
    %c0_i32_0 = arith.constant 0 : i32
    %c0_i32_1 = arith.constant 0 : i32
    return %c0_i32, %c0_i32_0 : i32, i32
  }
  func.func @transform_3(%arg0: i32) -> (i32, i32, i32) {
    %c0_i32 = arith.constant 0 : i32
    %c0_i32_0 = arith.constant 0 : i32
    %c0_i32_1 = arith.constant 0 : i32
    %c0_i32_2 = arith.constant 0 : i32
    return %c0_i32, %c0_i32_0, %c0_i32_1 : i32, i32, i32
  }
  func.func @transform_4(%arg0: i32) -> (i32, i32, i32) {
    %c0_i32 = arith.constant 0 : i32
    %c0_i32_0 = arith.constant 0 : i32
    %c0_i32_1 = arith.constant 0 : i32
    return %arg0, %c0_i32, %c0_i32_0 : i32, i32, i32
  }
  func.func @transform_5(%arg0: i32) -> (i32, i32, i32) {
    %c0_i32 = arith.constant 0 : i32
    %c0_i32_0 = arith.constant 0 : i32
    %c0_i32_1 = arith.constant 0 : i32
    return %arg0, %c0_i32, %c0_i32_0 : i32, i32, i32
  }
}

module attributes {stable_mosaic.version = 11 : i64} {
  func.func @_bn_relu_maxpool_kernel(%arg0: i32, %arg1: memref<2x16x32xbf16, #tpu.memory_space<vmem>>, %arg2: memref<1x32xf32, #tpu.memory_space<vmem>>, %arg3: memref<1x32xf32, #tpu.memory_space<vmem>>, %arg4: memref<2x1x32xf32, #tpu.memory_space<vmem>>) attributes {dimension_semantics = [#tpu.dimension_semantics<parallel>], iteration_bounds = array<i64: 1>, scalar_prefetch = 0 : i64, scratch_operands = 0 : i64, tpu.core_type = #tpu.core_type<tc>, window_params = [{transform_indices = @transform_0, window_bounds = array<i64: 2, 16, 32>}, {pipeline_mode = #tpu.pipeline_mode<synchronous>, transform_indices = @transform_1, window_bounds = array<i64: 1, 32>}, {pipeline_mode = #tpu.pipeline_mode<synchronous>, transform_indices = @transform_2, window_bounds = array<i64: 1, 32>}, {transform_indices = @transform_3, window_bounds = array<i64: 2, 1, 32>}]} {
    %c0 = arith.constant 0 : index
    %c0_0 = arith.constant 0 : index
    %c0_1 = arith.constant 0 : index
    %0 = vector.load %arg1[%c0, %c0_0, %c0_1] : memref<2x16x32xbf16, #tpu.memory_space<vmem>>, vector<2x16x32xbf16>
    %1 = arith.extf %0 : vector<2x16x32xbf16> to vector<2x16x32xf32>
    %c0_2 = arith.constant 0 : index
    %c0_3 = arith.constant 0 : index
    %2 = vector.load %arg2[%c0_2, %c0_3] : memref<1x32xf32, #tpu.memory_space<vmem>>, vector<1x32xf32>
    %3 = vector.shape_cast %2 : vector<1x32xf32> to vector<1x1x32xf32>
    %4 = vector.broadcast %3 : vector<1x1x32xf32> to vector<2x16x32xf32>
    %5 = arith.mulf %1, %4 : vector<2x16x32xf32>
    %c0_4 = arith.constant 0 : index
    %c0_5 = arith.constant 0 : index
    %6 = vector.load %arg3[%c0_4, %c0_5] : memref<1x32xf32, #tpu.memory_space<vmem>>, vector<1x32xf32>
    %7 = vector.shape_cast %6 : vector<1x32xf32> to vector<1x1x32xf32>
    %8 = vector.broadcast %7 : vector<1x1x32xf32> to vector<2x16x32xf32>
    %9 = arith.addf %5, %8 : vector<2x16x32xf32>
    %cst = arith.constant 0.000000e+00 : f32
    %10 = vector.broadcast %cst : f32 to vector<2x16x32xf32>
    %11 = arith.maximumf %9, %10 : vector<2x16x32xf32>
    %cst_6 = arith.constant dense<0xFF800000> : vector<2x32xf32>
    %12 = vector.multi_reduction <maximumf>, %11, %cst_6 [1] : vector<2x16x32xf32> to vector<2x32xf32>
    %13 = vector.shape_cast %12 : vector<2x32xf32> to vector<2x1x32xf32>
    %c0_7 = arith.constant 0 : index
    %c0_8 = arith.constant 0 : index
    %c0_9 = arith.constant 0 : index
    %14 = vector.load %arg4[%c0_7, %c0_8, %c0_9] : memref<2x1x32xf32, #tpu.memory_space<vmem>>, vector<2x1x32xf32>
    tpu.vector_store %arg4[%c0_7, %c0_8, %c0_9], %13 {strides = array<i32>} : memref<2x1x32xf32, #tpu.memory_space<vmem>>, vector<2x1x32xf32>,
    return
  }
  func.func @transform_0(%arg0: i32) -> (i32, i32, i32) {
    %c0_i32 = arith.constant 0 : i32
    %c0_i32_0 = arith.constant 0 : i32
    %c0_i32_1 = arith.constant 0 : i32
    return %arg0, %c0_i32, %c0_i32_0 : i32, i32, i32
  }
  func.func @transform_1(%arg0: i32) -> (i32, i32) {
    %c0_i32 = arith.constant 0 : i32
    %c0_i32_0 = arith.constant 0 : i32
    %c0_i32_1 = arith.constant 0 : i32
    return %c0_i32, %c0_i32_0 : i32, i32
  }
  func.func @transform_2(%arg0: i32) -> (i32, i32) {
    %c0_i32 = arith.constant 0 : i32
    %c0_i32_0 = arith.constant 0 : i32
    %c0_i32_1 = arith.constant 0 : i32
    return %c0_i32, %c0_i32_0 : i32, i32
  }
  func.func @transform_3(%arg0: i32) -> (i32, i32, i32) {
    %c0_i32 = arith.constant 0 : i32
    %c0_i32_0 = arith.constant 0 : i32
    %c0_i32_1 = arith.constant 0 : i32
    return %arg0, %c0_i32, %c0_i32_0 : i32, i32, i32
  }
}

</mosaic_0001>

<bundles_post_ra>
// kernel: stack_cnn_forward.7
= control target key start
LH: loop header
LB: loop body
LE: loop exit
PB: predicated region body
PF: predicated region fallthrough
CT: control target
= control target key end

     0   :  { %s172_s0 = inlined_call_operand.vmem [shape: bf16[2,16,32], index: 0, kind: input, shape index: {}]   ;;  %s173_s1 = inlined_call_operand.vmem [shape: f32[1,32], index: 1, kind: input, shape index: {}]   ;;  %s174_s2 = inlined_call_operand.vmem [shape: f32[1,32], index: 2, kind: input, shape index: {}]   ;;  %s175_s3 = inlined_call_operand.hbm [shape: f32[2,1,32], index: 3, kind: output, shape index: {}]  }
   0x1   :  { %v90_v0 = vld [vmem:[%s172_s0] sm:$0xff]   ;;  %v97_v4 = vld [vmem:[%s172_s0 + $0x8] sm:$0xff]  }
   0x2   :  { %v87_v1 = vld [vmem:[%s173_s1] ss:$0 sm:$0xff]  ;;  %v91_v2 = vunpack.c.l.bf16 %v90_v0  ;;  %v92_v3 = vunpack.c.h.bf16 %v90_v0 }
   0x3   :  { %8 = vsyncpa [#allocation3], 0  ;;  %v88_v5 = vld [vmem:[%s174_s2] ss:$0 sm:$0xff]  ;;  %v95_v6 = vunpack.c.l.bf16 %v97_v4  ;;  %v96_v7 = vunpack.c.h.bf16 %v97_v4  ;;  %vm49_vm0 = vcmask 261120   ;;  %s125_s0 = smov [#allocation2]  }
   0x4   :  { %v30_v8 = vmul.f32 %v91_v2, %v87_v1  ;;  %v31_v9 = vmul.f32 %v92_v3, %v87_v1  ;;  %s76_s1 = sshll.u32 %s125_s0, 4  ;;  %vm68_vm1 = vcmask 253952   ;;  %s77_s1 = int_to_ptr.vmem [resolvable:$true] %s76_s1 }
   0x5   :  { %v32_v10 = vmul.f32 %v95_v6, %v87_v1  ;;  %v33_v11 = vmul.f32 %v96_v7, %v87_v1  ;;  %s101_s2 = scalar_lea.vmem %s77_s1, 32  ;;  %p106_p1 = scmp.lt.s32.totalorder %s77_s1, %s77_s1 }
   0x6   :  { %v41_v12 = vadd.f32 %v88_v5, %v30_v8  ;;  %v42_v13 = vadd.f32 %v88_v5, %v31_v9  ;;  %p102_p0 = scmp.ne.s32.totalorder %s77_s1, %s101_s2  ;;  %p107_p2 = scmp.lt.s32.totalorder %s101_s2, %s101_s2 }
   0x7   :  { %v43_v14 = vadd.f32 %v88_v5, %v32_v10  ;;  %v44_v15 = vadd.f32 %v88_v5, %v33_v11 }
   0x8   :  { %v45_v16 = vmax.f32 %v41_v12, 0.0  ;;  %v46_v17 = vmax.f32 %v42_v13, 0.0  ;;  %p108_p3 = por %p107_p2, %p106_p1 }
   0x9   :  { %v47_v18 = vmax.f32 %v43_v14, 0.0  ;;  %v48_v19 = vmax.f32 %v44_v15, 0.0 }
   0xa   :  { %v50_v20 = vsel %vm49_vm0, %v45_v16, -inf  ;;  %v51_v21 = vsel %vm49_vm0, %v46_v17, -inf  ;;  %p109_p4 = pnand %p108_p3, %p102_p0 }
   0xb   :  { %v52_v22 = vmax.f32 %v50_v20, %v51_v21  ;;  %v59_v23 = vsel %vm49_vm0, %v47_v18, -inf  ;;  %v60_v24 = vsel %vm49_vm0, %v48_v19, -inf }
   0xc   :  { %v61_v25 = vmax.f32 %v59_v23, %v60_v24 }
   0xd   :  { %v53_v26 = vrot.slane %v52_v22, 4 }
   0xe   :  { %v62_v27 = vrot.slane %v61_v25, 4 }
   0xf   :  { %v54_v28 = vmax.f32 %v52_v22, %v53_v26 }
  0x10   :  { %v63_v29 = vmax.f32 %v61_v25, %v62_v27 }
  0x11   :  { %v55_v30 = vrot.slane %v54_v28, 2 }
  0x12   :  { %v64_v31 = vrot.slane %v63_v29, 2 }
  0x13   :  { %v56_v32 = vmax.f32 %v54_v28, %v55_v30 }
  0x14   :  { %v65_v33 = vmax.f32 %v63_v29, %v64_v31 }
  0x15   :  { %v57_v34 = vrot.slane %v56_v32, 1 }
  0x16   :  { %v66_v35 = vrot.slane %v65_v33, 1 }
  0x17   :  { %v58_v36 = vmax.f32 %v56_v32, %v57_v34 }
  0x18   :  { %v67_v37 = vmax.f32 %v65_v33, %v66_v35 }
  0x19   :  { %69 = vst.msk [vmem:[#allocation2] sm:$0x1] %vm68_vm1, %v58_v36 }
  0x1a   :  { %70 = vst.msk [vmem:[#allocation2 + $0x1] sm:$0x1] %vm68_vm1, %v67_v37 }
  0x1b   :  { %112 = shalt.err (!%p109_p4)
}
  0x1c   :  { %s113_s22 = scalar_lea.hbm %s175_s3, 32 }
  0x1d   :  { %p114_p5 = scmp.ne.s32.totalorder %s175_s3, %s113_s22  ;;  %p117_p6 = scmp.lt.u32.totalorder %s113_s22, %s175_s3 }
  0x1f   :  { %p119_p7 = pnand %p117_p6, %p114_p5 }
  0x21   :  { %122 = shalt.err (!%p119_p7)
}
  0x22   :  { %s126_s27 = smov 16   ;;  %s127_s28 = smov 1  }
  0x23   :  { %82 = dma.vmem_to_hbm [thread:$0]  %s77_s1, 32, %s175_s3, [#allocation3], %s126_s27, %s126_s27, %s127_s28  }
  0x24   :  { %123 = dma.done.wait [#allocation3], 32  }
  0x25   :  { %124 = vsyncadd [#allocation3], 4294967264 }
  0x26   :  { %86 = vsyncpa [#allocation3], 1 }

// kernel: stack_cnn_forward.4
= control target key start
LH: loop header
LB: loop body
LE: loop exit
PB: predicated region body
PF: predicated region fallthrough
CT: control target
= control target key end

     0   :  { %vm167_vm0 = vcmask 1041408   ;;  %vm18_vm1 = vcmask 24576   ;;  %vm19_vm2 = vsmask.f32 256  ;;  %v21_v0 = vld [vmem:[#allocation2] sm:$0x1]  ;;  %s655_s1 = inlined_call_operand.vmem [shape: bf16[3,4,32], index: 1, kind: input, shape index: {}]   ;;  %s656_s0 = inlined_call_operand.vmem [shape: bf16[2,16,4], index: 0, kind: input, shape index: {}]   ;;  %s657_s2 = inlined_call_operand.vmem [shape: bf16[2,16,32], index: 2, kind: output, shape index: {0}]   ;;  %s658_s3 = inlined_call_operand.vmem [shape: f32[1,2,32], index: 3, kind: output, shape index: {1}]  }
   0x1   :  { %v98_v1 = vld [vmem:[%s655_s1] sm:$0x3]  ;;  %v15_v3 = vld [vmem:[%s656_s0 + $0x4] sm:$0xf]  ;;  %v16_v5 = vld [vmem:[%s656_s0 + $0x8] sm:$0xf] }
   0x2   :  { %v14_v2 = vld [vmem:[%s656_s0] sm:$0xf]  ;;  %505 = vmatprep.subr.msk.bf16.mxu0 %vm167_vm0, %v98_v1  ;;  %v237_v4 = vsel %vm167_vm0, %v98_v1, 0  ;;  %v17_v6 = vld [vmem:[%s656_s0 + $0xc] sm:$0xf]  ;;  %vm548_vm3 = vmand %vm18_vm1, %vm19_vm2  ;;  %v46_v17 = vshrl.u32 %v15_v3, 16 }
   0x3   :  { %v38_v8 = vshrl.u32 %v14_v2, 16  ;;  %485 = vmatpush3.bf16.msra.mxu0 %v237_v4  ;;  %v22_v9 = vsel %vm548_vm3, 0, %v21_v0  ;;  %v24_v10 = vld [vmem:[#allocation2 + $0xc] sm:$0x1]  ;;  %vm27_vm4 = vsmask.f32 7938 }
   0x4   :  { %v41_v11 = vshll.u32 %v14_v2, 16  ;;  %23 = vst [vmem:[#allocation2] sm:$0x1] %v22_v9  ;;  %v25_v12 = vsel %vm548_vm3, 0, %v24_v10  ;;  %vm558_vm5 = vmand %vm18_vm1, %vm27_vm4  ;;  %v32_v14 = vld [vmem:[#allocation2 + $0x14] sm:$0x1] }
   0x5   :  { %vm35_vm6 = vsmask.f32 4368  ;;  %v40_v15 = vrot.slane %v38_v8, 7  ;;  %26 = vst [vmem:[#allocation2 + $0xc] sm:$0x1] %v25_v12  ;;  %v33_v16 = vsel %vm558_vm5, 0, %v32_v14 }
   0x6   :  { %v49_v18 = vshll.u32 %v15_v3, 16  ;;  %v55_v19 = vshrl.u32 %v16_v5, 16  ;;  %v456_v20 = vld [vmem:[%s655_s1 + $0x4] sm:$0x3]  ;;  %34 = vst [vmem:[#allocation2 + $0x14] sm:$0x1] %v33_v16  ;;  %vm36_vm8 = vmor %vm19_vm2, %vm35_vm6 }
   0x7   :  { %v44_v21 = vrot.slane %v40_v15, 4  ;;  %v58_v22 = vshll.u32 %v16_v5, 16  ;;  %v63_v23 = vshrl.u32 %v17_v6, 16  ;;  %506 = vmatprep.subr.msk.bf16.mxu0 %vm167_vm0, %v456_v20  ;;  %v445_v24 = vld [vmem:[%s655_s1 + $0x2] sm:$0x3]  ;;  %v48_v25 = vrot.slane %v46_v17, 7 }
   0x8   :  { %v57_v26 = vrot.slane %v55_v19, 7  ;;  %v66_v27 = vshll.u32 %v17_v6, 16  ;;  %vm77_vm7 = vcmask 27648   ;;  %504 = vmatprep.subr.msk.bf16.mxu1 %vm167_vm0, %v445_v24  ;;  %v29_v28 = vld [vmem:[#allocation2 + $0x8] sm:$0x1]  ;;  %v43_v29 = vor.u32 %v41_v11, %v40_v15 }
   0x9   :  { %v65_v30 = vrot.slane %v63_v23, 7  ;;  %v169_v31 = vsel %vm167_vm0, %v445_v24, 0  ;;  %v51_v32 = vor.u32 %v49_v18, %v48_v25  ;;  %vm577_vm9 = vmand %vm77_vm7, %vm27_vm4  ;;  %v30_v38 = vsel %vm558_vm5, 0, %v29_v28 }
   0xa   :  { %v60_v33 = vor.u32 %v58_v22, %v57_v26  ;;  %v61_v34 = vrot.slane %v57_v26, 4  ;;  %479 = vmatpush3.bf16.msra.mxu1 %v169_v31  ;;  %31 = vst [vmem:[#allocation2 + $0x8] sm:$0x1] %v30_v38  ;;  %v53_v47 = vrot.slane %v48_v25, 4  ;;  %vm160_vm10 = vcmask 31744  }
   0xb   :  { %v68_v36 = vor.u32 %v66_v27, %v65_v30  ;;  %v70_v37 = vrot.slane %v65_v30, 4  ;;  %v52_v39 = vsel %vm36_vm8, %v44_v21, %v51_v32  ;;  %v79_v40 = vld [vmem:[#allocation2] sm:$0xf]  ;;  %vm101_vm11 = vsmask.f32 3328 }
   0xc   :  { %v80_v42 = vsel %vm577_vm9, %v43_v29, %v79_v40  ;;  %83 = vst.msk [vmem:[#allocation2 + $0x4] sm:$0xf] %vm77_vm7, %v52_v39  ;;  %v87_v43 = vld [vmem:[#allocation2 + $0xc] sm:$0xf]  ;;  %v326_v50 = vsel %vm167_vm0, %v456_v20, 0  ;;  %vm294_vm13 = vcmask 1042432  }
   0xd   :  { %v69_v41 = vsel %vm36_vm8, %v61_v34, %v68_v36  ;;  %81 = vst [vmem:[#allocation2] sm:$0xf] %v80_v42  ;;  %v88_v44 = vsel %vm577_vm9, %v60_v33, %v87_v43  ;;  %v91_v45 = vld [vmem:[#allocation2 + $0x14] sm:$0x1]  ;;  %vm102_vm12 = vsmask.f32 7440 }
   0xe   :  { %90 = vst.msk [vmem:[#allocation2 + $0x10] sm:$0xf] %vm77_vm7, %v69_v41  ;;  %v92_v46 = vsel %vm548_vm3, %v70_v37, %v91_v45  ;;  %89 = vst [vmem:[#allocation2 + $0xc] sm:$0xf] %v88_v44  ;;  %vm295_vm14 = vcmask 1046532   ;;  %vm397_vm1 = vcmask 257024  }
   0xf   :  { %93 = vst [vmem:[#allocation2 + $0x14] sm:$0x1] %v92_v46  ;;  %vm598_vm15 = vmor %vm101_vm11, %vm102_vm12  ;;  %vm402_vm2 = vcmask 261120   ;;  %vm435_vm4 = vcmask 254976  }
  0x10   :  { %vm604_vm0 = vmor %vm294_vm13, %vm295_vm14 }
  0x11   :  { %v84_v48 = vld [vmem:[#allocation2 + $0x8] sm:$0x1] }
  0x12   :  { %v85_v51 = vsel %vm548_vm3, %v53_v47, %v84_v48  ;;  %vm433_vm3 = vcmask 1040384  }
  0x13   :  { %v95_v49 = vld [vmem:[#allocation2 + $0x4] sm:$0xf]  ;;  %86 = vst [vmem:[#allocation2 + $0x8] sm:$0x1] %v85_v51 }
  0x14   :  { %v94_v52 = vld [vmem:[#allocation2] sm:$0xf]  ;;  %v118_v53 = vshrl.u32 %v95_v49, 16  ;;  %v299_v54 = vrot.slane %v95_v49, 5  ;;  %v114_v4 = vshll.u32 %v95_v49, 16 }
  0x15   :  { %v97_v55 = vld [vmem:[#allocation2 + $0x10] sm:$0xf]  ;;  %v105_v56 = vshrl.u32 %v94_v52, 16  ;;  %v108_v57 = vshll.u32 %v94_v52, 16  ;;  %v450_v58 = vcombine.low %v94_v52, %v95_v49  ;;  %v96_v59 = vld [vmem:[#allocation2 + $0xc] sm:$0xf] }
  0x16   :  { %v142_v60 = vshrl.u32 %v97_v55, 16  ;;  %v129_v61 = vshrl.u32 %v96_v59, 16  ;;  %v132_v62 = vshll.u32 %v96_v59, 16  ;;  %v451_v63 = vcombine.low %v96_v59, %v97_v55  ;;  %v100_v0 = vld [vmem:[#allocation2 + $0x14] sm:$0x1] }
  0x17   :  { %v107_v1 = vrot.slane %v105_v56, 4  ;;  %v110_v2 = vrot.slane %v108_v57, 5  ;;  %486 = vmatprep.mubr.msk.bf16.mxu0 %vm160_vm10, %v450_v58  ;;  %v301_v3 = vrot.slane %v299_v54, 4  ;;  %v288_v5 = vld [vmem:[#allocation2] sm:$0xe]  ;;  %v120_v8 = vrot.slane %v118_v53, 4 }
  0x18   :  { %v131_v6 = vrot.slane %v129_v61, 4  ;;  %v134_v7 = vrot.slane %v132_v62, 5  ;;  %487 = vmatmul.mubr.msk.bf16.vlgmr.msra.gmra.mrb[0].mxu0 %vm160_vm10, %v451_v63  ;;  %v138_v9 = vshll.u32 %v97_v55, 16  ;;  %v289_v10 = vld [vmem:[#allocation2 + $0xc] sm:$0xe]  ;;  %v116_v13 = vrot.slane %v114_v4, 5 }
  0x19   :  { %491 = vmatpush3.bf16.msra.mxu0 %v326_v50  ;;  %v111_v12 = vor.u32 %v110_v2, %v107_v1  ;;  %v144_v14 = vrot.slane %v142_v60, 4  ;;  %v148_v15 = vshll.u32 %v100_v0, 16  ;;  %v306_v16 = vrot.slane %v97_v55, 5 }
  0x1a   :  { %v135_v17 = vor.u32 %v134_v7, %v131_v6  ;;  %v140_v18 = vrot.slane %v138_v9, 5  ;;  %v454_v20 = vrot.slane %v288_v5, 9  ;;  %v99_v21 = vld [vmem:[#allocation2 + $0x8] sm:$0x1]  ;;  %v121_v23 = vor.u32 %v120_v8, %v116_v13 }
  0x1b   :  { %v112_v22 = vrot.slane %v111_v12, 4  ;;  %v150_v24 = vrot.slane %v148_v15, 5  ;;  %v455_v25 = vrot.slane %v289_v10, 9  ;;  %v124_v26 = vshll.u32 %v99_v21, 16 }
  0x1c   :  { %v302_v27 = vrot.slane %v99_v21, 5  ;;  %v136_v28 = vrot.slane %v135_v17, 4  ;;  %v145_v29 = vor.u32 %v144_v14, %v140_v18  ;;  %v122_v31 = vrot.slane %v121_v23, 4 }
  0x1d   :  { %v117_v30 = vsel %vm598_vm15, %v112_v22, %v116_v13  ;;  %v309_v32 = vrot.slane %v100_v0, 5  ;;  %v300_v33 = vsel %vm604_vm0, %v454_v20, %v299_v54  ;;  %v126_v34 = vrot.slane %v124_v26, 5 }
  0x1e   :  { %v141_v35 = vsel %vm598_vm15, %v136_v28, %v140_v18  ;;  %v146_v36 = vrot.slane %v145_v29, 4  ;;  %v303_v37 = vsel %vm604_vm0, %v301_v3, %v302_v27  ;;  %v307_v39 = vsel %vm604_vm0, %v455_v25, %v306_v16 }
  0x1f   :  { %v457_v38 = vcombine.low %v300_v33, %v303_v37  ;;  %v308_v40 = vrot.slane %v306_v16, 4  ;;  %v127_v41 = vsel %vm598_vm15, %v122_v31, %v126_v34 }
  0x20   :  { %v151_v42 = vsel %vm598_vm15, %v146_v36, %v150_v24  ;;  %v446_v43 = vcombine.low %v117_v30, %v127_v41 }
  0x21   :  { %v447_v44 = vcombine.low %v141_v35, %v151_v42  ;;  %492 = vmatprep.mubr.msk.bf16.mxu0 %vm160_vm10, %v457_v38  ;;  %v310_v45 = vsel %vm604_vm0, %v308_v40, %v309_v32 }
  0x22   :  { %v458_v46 = vcombine.low %v307_v39, %v310_v45  ;;  %480 = vmatprep.mubr.msk.bf16.mxu1 %vm160_vm10, %v446_v43 }
  0x23   :  { %481 = vmatmul.mubr.msk.bf16.vlgmr.msra.gmra.mrb[0].mxu1 %vm160_vm10, %v447_v44 }
  0x24   :  { %493 = vmatmul.mubr.msk.bf16.vlgmr.msra.gmra.mrb[0].mxu0 %vm160_vm10, %v458_v46 }
  0xf6   :  { %v482_v47 = vpop.f32.mrb[0].mxu1 }
  0xf7   :  { %v494_v48 = vpop.f32.mrb[0].mxu0  ;;  %v205_v49 = vpop.f32.mrb[1].mxu1 }
  0xf8   :  { %v496_v50 = vadd.f32 %v494_v48, %v482_v47  ;;  %v362_v51 = vpop.f32.mrb[1].mxu0  ;;  %v483_v52 = vpop.f32.mrb[2].mxu1 }
  0xf9   :  { %v497_v53 = vadd.f32 %v362_v51, %v205_v49  ;;  %v495_v54 = vpop.f32.mrb[2].mxu0  ;;  %v208_v55 = vpop.f32.mrb[3].mxu1 }
  0xfa   :  { %v467_v56 = vpack.c.bf16 %v496_v50, %v496_v50  ;;  %v498_v57 = vadd.f32 %v495_v54, %v483_v52  ;;  %v365_v58 = vpop.f32.mrb[3].mxu0  ;;  %v418_v62 = vmul.f32 %v496_v50, %v496_v50  ;;  %v406_v5 = vsel %vm402_vm2, %v496_v50, 0.0 }
  0xfb   :  { %v465_v59 = vpack.c.bf16 %v497_v53, %v497_v53  ;;  %v416_v60 = vmul.f32 %v497_v53, %v497_v53  ;;  %v499_v61 = vadd.f32 %v365_v58, %v208_v55  ;;  %v403_v0 = vsel %vm402_vm2, %v497_v53, 0.0 }
  0xfc   :  { %400 = vst.msk [vmem:[%s657_s2 + $0x8] sm:$0xf] %vm397_vm1, %v467_v56  ;;  %v468_v63 = vpack.c.bf16 %v498_v57, %v498_v57  ;;  %v419_v7 = vmul.f32 %v498_v57, %v498_v57  ;;  %v423_v11 = vsel %vm402_vm2, %v418_v62, 0.0  ;;  %v408_v12 = vsel %vm402_vm2, %v498_v57, 0.0 }
  0xfd   :  { %398 = vst.msk [vmem:[%s657_s2] sm:$0xf] %vm397_vm1, %v465_v59  ;;  %v466_v1 = vpack.c.bf16 %v499_v61, %v499_v61  ;;  %v404_v2 = vsel %vm402_vm2, %v499_v61, 0.0  ;;  %v417_v3 = vmul.f32 %v499_v61, %v499_v61  ;;  %v420_v6 = vsel %vm402_vm2, %v416_v60, 0.0 }
  0xfe   :  { %401 = vst.msk [vmem:[%s657_s2 + $0xc] sm:$0xf] %vm397_vm1, %v468_v63  ;;  %v405_v4 = vadd.f32 %v404_v2, %v403_v0  ;;  %v425_v15 = vsel %vm402_vm2, %v419_v7, 0.0 }
  0xff   :  { %399 = vst.msk [vmem:[%s657_s2 + $0x4] sm:$0xf] %vm397_vm1, %v466_v1  ;;  %v421_v8 = vsel %vm402_vm2, %v417_v3, 0.0 }
 0x100   :  { %v407_v9 = vadd.f32 %v406_v5, %v405_v4  ;;  %v422_v10 = vadd.f32 %v421_v8, %v420_v6 }
 0x102   :  { %v409_v13 = vadd.f32 %v408_v12, %v407_v9  ;;  %v424_v14 = vadd.f32 %v423_v11, %v422_v10 }
 0x104   :  { %v410_v16 = vrot.slane %v409_v13, 4  ;;  %v426_v17 = vadd.f32 %v425_v15, %v424_v14 }
 0x106   :  { %v411_v18 = vadd.f32 %v410_v16, %v409_v13  ;;  %v427_v19 = vrot.slane %v426_v17, 4 }
 0x108   :  { %v412_v20 = vrot.slane %v411_v18, 2  ;;  %v428_v21 = vadd.f32 %v427_v19, %v426_v17 }
 0x10a   :  { %v413_v22 = vadd.f32 %v412_v20, %v411_v18  ;;  %v429_v23 = vrot.slane %v428_v21, 2 }
 0x10c   :  { %v414_v24 = vrot.slane %v413_v22, 1  ;;  %v430_v25 = vadd.f32 %v429_v23, %v428_v21 }
 0x10e   :  { %v431_v26 = vrot.slane %v430_v25, 1  ;;  %v415_v27 = vadd.f32 %v414_v24, %v413_v22 }
 0x110   :  { %v432_v28 = vadd.f32 %v431_v26, %v430_v25 }
 0x112   :  { %v434_v29 = vsel %vm433_vm3, %v415_v27, %v432_v28 }
 0x113   :  { %436 = vst.msk [vmem:[%s658_s3] sm:$0x3] %vm435_vm4, %v434_v29 }

// kernel: stack_cnn_forward.5
= control target key start
LH: loop header
LB: loop body
LE: loop exit
PB: predicated region body
PF: predicated region fallthrough
CT: control target
= control target key end

     0   :  { %vm57_vm0 = vsmask.f32 256  ;;  %v59_v0 = vld [vmem:[#allocation2] sm:$0x1]  ;;  %vm56_vm1 = vcmask 253952   ;;  %vm125_vm6 = vcmask 257024   ;;  %s803_s3 = inlined_call_operand.vmem [shape: bf16[3,32,32], index: 3, kind: input, shape index: {}]   ;;  %s804_s0 = inlined_call_operand.vmem [shape: bf16[2,16,32], index: 0, kind: input, shape index: {}]   ;;  %s805_s1 = inlined_call_operand.vmem [shape: f32[1,32], index: 1, kind: input, shape index: {}]   ;;  %s806_s2 = inlined_call_operand.vmem [shape: f32[1,32], index: 2, kind: input, shape index: {}]   ;;  %s807_s4 = inlined_call_operand.vmem [shape: bf16[2,16,32], index: 4, kind: output, shape index: {0}]   ;;  %s808_s5 = inlined_call_operand.vmem [shape: f32[1,2,32], index: 5, kind: output, shape index: {1}]  }
   0x1   :  { %v625_v1 = vld [vmem:[%s803_s3] sm:$0xff]   ;;  %v626_v2 = vld [vmem:[%s803_s3 + $0x8] sm:$0xff]   ;;  %vm65_vm2 = vsmask.f32 7938  ;;  %vm680_vm3 = vmand %vm56_vm1, %vm57_vm0  ;;  %vm83_vm5 = vsmask.f32 4368 }
   0x2   :  { %601 = vmatprep.subr.bf16.mxu0 %v625_v1  ;;  %v573_v3 = vld [vmem:[%s804_s0] sm:$0xff]   ;;  %v580_v4 = vld [vmem:[%s804_s0 + $0x8] sm:$0xff]   ;;  %v60_v13 = vsel %vm680_vm3, 0, %v59_v0  ;;  %vm693_vm4 = vmand %vm56_vm1, %vm65_vm2  ;;  %vm226_vm9 = vcmask 261120   ;;  %vm152_vm10 = vsmask.f32 3328 }
   0x3   :  { %v526_v5 = vld [vmem:[%s805_s1] ss:$0 sm:$0xff]  ;;  %602 = vmatpush3.bf16.msra.mxu0 %v625_v1  ;;  %v574_v6 = vunpack.c.l.bf16 %v573_v3  ;;  %v575_v7 = vunpack.c.h.bf16 %v573_v3  ;;  %v578_v8 = vunpack.c.l.bf16 %v580_v4  ;;  %v579_v9 = vunpack.c.h.bf16 %v580_v4  ;;  %v62_v11 = vld [vmem:[#allocation2 + $0xc] sm:$0x1]  ;;  %v70_v16 = vld [vmem:[#allocation2 + $0x14] sm:$0x1] }
   0x4   :  { %603 = vmatprep.subr.bf16.mxu0 %v626_v2  ;;  %v527_v12 = vld [vmem:[%s806_s2] ss:$0 sm:$0xff]  ;;  %v63_v14 = vsel %vm680_vm3, 0, %v62_v11  ;;  %61 = vst [vmem:[#allocation2] sm:$0x1] %v60_v13  ;;  %v71_v21 = vsel %vm693_vm4, 0, %v70_v16  ;;  %vm714_vm7 = vmor %vm57_vm0, %vm83_vm5 }
   0x5   :  { %v35_v17 = vmul.f32 %v574_v6, %v526_v5  ;;  %v36_v18 = vmul.f32 %v575_v7, %v526_v5  ;;  %v37_v19 = vmul.f32 %v578_v8, %v526_v5  ;;  %v38_v20 = vmul.f32 %v579_v9, %v526_v5  ;;  %64 = vst [vmem:[#allocation2 + $0xc] sm:$0x1] %v63_v14  ;;  %v702_v22 = vld [vmem:[%s803_s3 + $0x20] sm:$0xff]   ;;  %v630_v27 = vld [vmem:[%s803_s3 + $0x10] sm:$0xff]   ;;  %v631_v28 = vld [vmem:[%s803_s3 + $0x18] sm:$0xff]  }
   0x6   :  { %72 = vst [vmem:[#allocation2 + $0x14] sm:$0x1] %v71_v21  ;;  %593 = vmatprep.subr.bf16.mxu1 %v630_v27  ;;  %v67_v33 = vld [vmem:[#allocation2 + $0x8] sm:$0x1]  ;;  %vm720_vm8 = vmand %vm125_vm6, %vm65_vm2  ;;  %vm365_vm11 = vcmask 1042432   ;;  %vm366_vm12 = vcmask 1046532  }
   0x7   :  { %604 = vmatpush3.bf16.msra.mxu0 %v626_v2  ;;  %v46_v23 = vadd.f32 %v527_v12, %v35_v17  ;;  %v47_v24 = vadd.f32 %v527_v12, %v36_v18  ;;  %v48_v25 = vadd.f32 %v527_v12, %v37_v19  ;;  %v49_v26 = vadd.f32 %v527_v12, %v38_v20  ;;  %vm745_vm14 = vmor %vm365_vm11, %vm366_vm12 }
   0x8   :  { %609 = vmatprep.subr.bf16.mxu0 %v702_v22  ;;  %594 = vmatpush3.bf16.msra.mxu1 %v630_v27  ;;  %v68_v38 = vsel %vm693_vm4, 0, %v67_v33  ;;  %vm153_vm13 = vsmask.f32 7440  ;;  %vm514_vm0 = vcmask 1040384   ;;  %vm516_vm1 = vcmask 254976  }
   0x9   :  { %v50_v29 = vmax.f32 %v46_v23, 0.0  ;;  %v51_v30 = vmax.f32 %v47_v24, 0.0  ;;  %v52_v31 = vmax.f32 %v48_v25, 0.0  ;;  %v53_v32 = vmax.f32 %v49_v26, 0.0  ;;  %595 = vmatprep.subr.bf16.mxu1 %v631_v28  ;;  %69 = vst [vmem:[#allocation2 + $0x8] sm:$0x1] %v68_v38  ;;  %vm752_vm15 = vmor %vm152_vm10, %vm153_vm13 }
   0xa   :  { %v632_v24 = vld [vmem:[%s803_s3 + $0x28] sm:$0xff]  }
   0xb   :  { %v564_v34 = vpack.c.bf16 %v50_v29, %v50_v29  ;;  %v565_v35 = vpack.c.bf16 %v51_v30, %v51_v30  ;;  %v566_v36 = vpack.c.bf16 %v52_v31, %v52_v31  ;;  %v567_v37 = vpack.c.bf16 %v53_v32, %v53_v32  ;;  %v127_v53 = vld [vmem:[#allocation2] sm:$0xf] }
   0xc   :  { %596 = vmatpush3.bf16.msra.mxu1 %v631_v28  ;;  %v135_v58 = vld [vmem:[#allocation2 + $0xc] sm:$0xf] }
   0xd   :  { %v86_v39 = vshrl.u32 %v564_v34, 16  ;;  %v89_v40 = vshll.u32 %v564_v34, 16  ;;  %v94_v41 = vshrl.u32 %v565_v35, 16  ;;  %v97_v42 = vshll.u32 %v565_v35, 16  ;;  %v139_v59 = vld [vmem:[#allocation2 + $0x14] sm:$0x1] }
   0xe   :  { %v103_v43 = vshrl.u32 %v566_v36, 16  ;;  %v106_v44 = vshll.u32 %v566_v36, 16  ;;  %v111_v45 = vshrl.u32 %v567_v37, 16  ;;  %v114_v46 = vshll.u32 %v567_v37, 16 }
   0xf   :  { %v88_v48 = vrot.slane %v86_v39, 7  ;;  %v96_v49 = vrot.slane %v94_v41, 7 }
  0x10   :  { %v105_v50 = vrot.slane %v103_v43, 7  ;;  %v113_v51 = vrot.slane %v111_v45, 7  ;;  %v132_v5 = vld [vmem:[#allocation2 + $0x8] sm:$0x1] }
  0x11   :  { %v91_v54 = vor.u32 %v89_v40, %v88_v48  ;;  %v92_v55 = vrot.slane %v88_v48, 4  ;;  %v99_v56 = vor.u32 %v97_v42, %v96_v49  ;;  %v101_v57 = vrot.slane %v96_v49, 4 }
  0x12   :  { %v108_v60 = vor.u32 %v106_v44, %v105_v50  ;;  %v109_v61 = vrot.slane %v105_v50, 4  ;;  %v116_v62 = vor.u32 %v114_v46, %v113_v51  ;;  %v118_v63 = vrot.slane %v113_v51, 4 }
  0x13   :  { %v100_v0 = vsel %vm714_vm7, %v92_v55, %v99_v56  ;;  %v128_v1 = vsel %vm720_vm8, %v91_v54, %v127_v53  ;;  %v133_v6 = vsel %vm680_vm3, %v101_v57, %v132_v5 }
  0x14   :  { %v117_v2 = vsel %vm714_vm7, %v109_v61, %v116_v62  ;;  %129 = vst [vmem:[#allocation2] sm:$0xf] %v128_v1  ;;  %131 = vst.msk [vmem:[#allocation2 + $0x4] sm:$0xf] %vm125_vm6, %v100_v0  ;;  %v136_v3 = vsel %vm720_vm8, %v108_v60, %v135_v58  ;;  %v140_v4 = vsel %vm680_vm3, %v118_v63, %v139_v59 }
  0x15   :  { %137 = vst [vmem:[#allocation2 + $0xc] sm:$0xf] %v136_v3  ;;  %138 = vst.msk [vmem:[#allocation2 + $0x10] sm:$0xf] %vm125_vm6, %v117_v2 }
  0x16   :  { %141 = vst [vmem:[#allocation2 + $0x14] sm:$0x1] %v140_v4  ;;  %134 = vst [vmem:[#allocation2 + $0x8] sm:$0x1] %v133_v6 }
  0x1b   :  { %v142_v7 = vld [vmem:[#allocation2] sm:$0xf]  ;;  %v143_v8 = vld [vmem:[#allocation2 + $0x4] sm:$0xf] }
  0x1c   :  { %v156_v9 = vshrl.u32 %v142_v7, 16  ;;  %v159_v11 = vshll.u32 %v142_v7, 16  ;;  %v169_v12 = vshrl.u32 %v143_v8, 16  ;;  %v542_v13 = vcombine.low %v142_v7, %v143_v8  ;;  %v144_v14 = vld [vmem:[#allocation2 + $0xc] sm:$0xf] }
  0x1d   :  { %v370_v15 = vrot.slane %v143_v8, 5  ;;  %v145_v16 = vld [vmem:[#allocation2 + $0x10] sm:$0xf]  ;;  %v180_v17 = vshrl.u32 %v144_v14, 16  ;;  %v183_v18 = vshll.u32 %v144_v14, 16  ;;  %v165_v19 = vshll.u32 %v143_v8, 16 }
  0x1e   :  { %v158_v10 = vrot.slane %v156_v9, 4  ;;  %v161_v20 = vrot.slane %v159_v11, 5  ;;  %605 = vmatprep.mubr.msk.bf16.mxu0 %vm226_vm9, %v542_v13  ;;  %v193_v21 = vshrl.u32 %v145_v16, 16  ;;  %v543_v23 = vcombine.low %v144_v14, %v145_v16  ;;  %v150_v25 = vld [vmem:[#allocation2 + $0x8] sm:$0x1] }
  0x1f   :  { %v372_v26 = vrot.slane %v370_v15, 4  ;;  %v182_v27 = vrot.slane %v180_v17, 4  ;;  %v185_v28 = vrot.slane %v183_v18, 5  ;;  %v377_v29 = vrot.slane %v145_v16, 5  ;;  %v151_v30 = vld [vmem:[#allocation2 + $0x14] sm:$0x1] }
  0x20   :  { %606 = vmatmul.mubr.msk.bf16.vlgmr.msra.gmra.mrb[0].mxu0 %vm226_vm9, %v543_v23  ;;  %v162_v31 = vor.u32 %v161_v20, %v158_v10  ;;  %v167_v32 = vrot.slane %v165_v19, 5  ;;  %v171_v33 = vrot.slane %v169_v12, 4  ;;  %v175_v34 = vshll.u32 %v150_v25, 16  ;;  %v359_v35 = vld [vmem:[#allocation2] sm:$0xe] }
  0x21   :  { %610 = vmatpush3.bf16.msra.mxu0 %v702_v22  ;;  %v373_v38 = vrot.slane %v150_v25, 5  ;;  %v186_v39 = vor.u32 %v185_v28, %v182_v27  ;;  %v189_v40 = vshll.u32 %v145_v16, 16  ;;  %v195_v41 = vrot.slane %v193_v21, 4  ;;  %v360_v46 = vld [vmem:[#allocation2 + $0xc] sm:$0xe] }
  0x22   :  { %611 = vmatprep.subr.bf16.mxu0 %v632_v24  ;;  %v163_v42 = vrot.slane %v162_v31, 4  ;;  %v172_v43 = vor.u32 %v171_v33, %v167_v32  ;;  %v177_v44 = vrot.slane %v175_v34, 5  ;;  %v199_v45 = vshll.u32 %v151_v30, 16 }
  0x23   :  { %v187_v47 = vrot.slane %v186_v39, 4  ;;  %v191_v48 = vrot.slane %v189_v40, 5  ;;  %v548_v49 = vrot.slane %v359_v35, 9  ;;  %v380_v51 = vrot.slane %v151_v30, 5 }
  0x24   :  { %v168_v22 = vsel %vm752_vm15, %v163_v42, %v167_v32  ;;  %v173_v50 = vrot.slane %v172_v43, 4  ;;  %v374_v52 = vsel %vm745_vm14, %v372_v26, %v373_v38  ;;  %v201_v54 = vrot.slane %v199_v45, 5 }
  0x25   :  { %612 = vmatpush3.bf16.msra.mxu0 %v632_v24  ;;  %v196_v53 = vor.u32 %v195_v41, %v191_v48  ;;  %v371_v55 = vsel %vm745_vm14, %v548_v49, %v370_v15  ;;  %v549_v56 = vrot.slane %v360_v46, 9  ;;  %v379_v59 = vrot.slane %v377_v29, 4 }
  0x26   :  { %v178_v57 = vsel %vm752_vm15, %v173_v50, %v177_v44  ;;  %v554_v58 = vcombine.low %v371_v55, %v374_v52  ;;  %v192_v61 = vsel %vm752_vm15, %v187_v47, %v191_v48 }
  0x27   :  { %v536_v60 = vcombine.low %v168_v22, %v178_v57  ;;  %v197_v62 = vrot.slane %v196_v53, 4  ;;  %v378_v63 = vsel %vm745_vm14, %v549_v56, %v377_v29  ;;  %v381_v0 = vsel %vm745_vm14, %v379_v59, %v380_v51 }
  0x28   :  { %613 = vmatprep.mubr.msk.bf16.mxu0 %vm226_vm9, %v554_v58  ;;  %v555_v2 = vcombine.low %v378_v63, %v381_v0 }
  0x29   :  { %597 = vmatprep.mubr.msk.bf16.mxu1 %vm226_vm9, %v536_v60  ;;  %v202_v1 = vsel %vm752_vm15, %v197_v62, %v201_v54 }
  0x2a   :  { %v537_v3 = vcombine.low %v192_v61, %v202_v1 }
  0x2c   :  { %598 = vmatmul.mubr.msk.bf16.vlgmr.msra.gmra.mrb[0].mxu1 %vm226_vm9, %v537_v3  ;;  %614 = vmatmul.mubr.msk.bf16.vlgmr.msra.gmra.mrb[0].mxu0 %vm226_vm9, %v555_v2 }
  0xff   :  { %v599_v4 = vpop.f32.mrb[0].mxu1  ;;  %v615_v5 = vpop.f32.mrb[0].mxu0 }
 0x100   :  { %v267_v6 = vpop.f32.mrb[1].mxu1  ;;  %v617_v7 = vadd.f32 %v615_v5, %v599_v4  ;;  %v445_v8 = vpop.f32.mrb[1].mxu0 }
 0x101   :  { %v600_v9 = vpop.f32.mrb[2].mxu1  ;;  %v618_v11 = vadd.f32 %v445_v8, %v267_v6  ;;  %v616_v12 = vpop.f32.mrb[2].mxu0 }
 0x102   :  { %v270_v13 = vpop.f32.mrb[3].mxu1  ;;  %v570_v14 = vpack.c.bf16 %v617_v7, %v617_v7  ;;  %v619_v15 = vadd.f32 %v616_v12, %v600_v9  ;;  %v448_v16 = vpop.f32.mrb[3].mxu0  ;;  %v499_v10 = vmul.f32 %v617_v7, %v617_v7  ;;  %v487_v27 = vsel %vm226_vm9, %v617_v7, 0.0 }
 0x103   :  { %v568_v17 = vpack.c.bf16 %v618_v11, %v618_v11  ;;  %v497_v18 = vmul.f32 %v618_v11, %v618_v11  ;;  %v620_v19 = vadd.f32 %v448_v16, %v270_v13  ;;  %v484_v21 = vsel %vm226_vm9, %v618_v11, 0.0 }
 0x104   :  { %482 = vst.msk [vmem:[%s807_s4 + $0x8] sm:$0xf] %vm125_vm6, %v570_v14  ;;  %v571_v20 = vpack.c.bf16 %v619_v15, %v619_v15  ;;  %v500_v29 = vmul.f32 %v619_v15, %v619_v15  ;;  %v504_v33 = vsel %vm226_vm9, %v499_v10, 0.0  ;;  %v489_v34 = vsel %vm226_vm9, %v619_v15, 0.0 }
 0x105   :  { %480 = vst.msk [vmem:[%s807_s4] sm:$0xf] %vm125_vm6, %v568_v17  ;;  %v569_v23 = vpack.c.bf16 %v620_v19, %v620_v19  ;;  %v485_v24 = vsel %vm226_vm9, %v620_v19, 0.0  ;;  %v498_v25 = vmul.f32 %v620_v19, %v620_v19  ;;  %v501_v28 = vsel %vm226_vm9, %v497_v18, 0.0 }
 0x106   :  { %483 = vst.msk [vmem:[%s807_s4 + $0xc] sm:$0xf] %vm125_vm6, %v571_v20  ;;  %v486_v26 = vadd.f32 %v485_v24, %v484_v21  ;;  %v506_v37 = vsel %vm226_vm9, %v500_v29, 0.0 }
 0x107   :  { %481 = vst.msk [vmem:[%s807_s4 + $0x4] sm:$0xf] %vm125_vm6, %v569_v23  ;;  %v502_v30 = vsel %vm226_vm9, %v498_v25, 0.0 }
 0x108   :  { %v488_v31 = vadd.f32 %v487_v27, %v486_v26  ;;  %v503_v32 = vadd.f32 %v502_v30, %v501_v28 }
 0x10a   :  { %v490_v35 = vadd.f32 %v489_v34, %v488_v31  ;;  %v505_v36 = vadd.f32 %v504_v33, %v503_v32 }
 0x10c   :  { %v491_v38 = vrot.slane %v490_v35, 4  ;;  %v507_v39 = vadd.f32 %v506_v37, %v505_v36 }
 0x10e   :  { %v492_v40 = vadd.f32 %v491_v38, %v490_v35  ;;  %v508_v41 = vrot.slane %v507_v39, 4 }
 0x110   :  { %v493_v42 = vrot.slane %v492_v40, 2  ;;  %v509_v43 = vadd.f32 %v508_v41, %v507_v39 }
 0x112   :  { %v494_v44 = vadd.f32 %v493_v42, %v492_v40  ;;  %v510_v45 = vrot.slane %v509_v43, 2 }
 0x114   :  { %v495_v46 = vrot.slane %v494_v44, 1  ;;  %v511_v47 = vadd.f32 %v510_v45, %v509_v43 }
 0x116   :  { %v512_v48 = vrot.slane %v511_v47, 1  ;;  %v496_v49 = vadd.f32 %v495_v46, %v494_v44 }
 0x118   :  { %v513_v22 = vadd.f32 %v512_v48, %v511_v47 }
 0x11a   :  { %v515_v50 = vsel %vm514_vm0, %v496_v49, %v513_v22 }
 0x11b   :  { %517 = vst.msk [vmem:[%s808_s5] sm:$0x3] %vm516_vm1, %v515_v50 }

</bundles_post_ra>
